<compile_context>
chip_gen: v6e
topology: v6e:2x2x1
jax: 0.10.0
libtpu: 0.0.40
codegen_flags: <defaults>
</compile_context>

<pallas_src>
import jax
import jax.numpy as jnp
from jax.experimental import pallas as pl
from jax.experimental.pallas import tpu as pltpu


# ----------------------------------------------------------------------------
# Pallas kernel: the whole NeuralDecisionTree forward for one batch tile.
# ----------------------------------------------------------------------------
def _make_tree_kernel(level_dims):
    """level_dims: static tuple of (n_stumps, n_features) per tree level."""

    def kernel(*refs):
        # refs = (x, cut_0, wf_0, ..., cut_{D-1}, wf_{D-1}, out)
        x_ref = refs[0]
        out_ref = refs[-1]
        prm = refs[1:-1]

        x = x_ref[...]                                   # (Bt, F0)
        layer = None
        for d, (n, _fd) in enumerate(level_dims):
            cut_ref = prm[2 * d]                         # (2, n*Fd)      packed cut points
            wf_ref = prm[2 * d + 1]                      # (2, n*Fd, 2n)  block-diag leaf*mask

            # tree_input = cat([x, previous layer], dim=1), replicated once per stump and
            # packed along lanes -> one (Bt, n*Fd) slab drives all stumps of this level.
            if d == 0:
                base = x
            else:
                base = jnp.concatenate([x, layer], axis=1)        # (Bt, Fd)
            ti = jnp.concatenate([base] * n, axis=1) if n > 1 else base

            cut = cut_ref[...]                           # (2, n*Fd)
            # torch.bmm(x.unsqueeze(-1), W) - cut_points, with W = [1., 2.]
            z0 = ti - cut[0:1, :]                        # (Bt, n*Fd)
            z1 = ti * 2.0 - cut[1:2, :]

            # entmax15 over the 2-element leaf axis (exact closed form on a 2-simplex).
            m = jnp.maximum(z0, z1)
            s0 = (z0 - m) * 0.5
            s1 = (z1 - m) * 0.5
            delta = jnp.abs(s0 - s1)
            rad = jnp.maximum((2.0 - delta * delta) * 0.25, 0.0)
            tau = jnp.where(delta <= 1.0, -0.5 * delta - jnp.sqrt(rad), -1.0)
            p0 = jnp.maximum(s0 - tau, 0.0)
            p0 = p0 * p0
            p1 = jnp.maximum(s1 - tau, 0.0)
            p1 = p1 * p1

            # Feature reduction + (leaf * feature_mask) weighting + per-level concat, as two
            # MXU matmuls against block-diagonal weights -> (Bt, 2n), already lane-dense and
            # in the torch.cat([...], dim=1) column order (stump i -> columns 2i, 2i+1).
            layer = (
                jnp.dot(p0, wf_ref[0], preferred_element_type=jnp.float32)
                + jnp.dot(p1, wf_ref[1], preferred_element_type=jnp.float32)
            )

        out_ref[...] = layer                             # (Bt, 2 * n_last)

    return kernel


# ----------------------------------------------------------------------------
# Plain-JAX glue: entmax15 of the parameter-only feature masks, parameter
# packing (fold mask into leaf responses, build block-diagonal weights).
# ----------------------------------------------------------------------------
def entmax15_lastdim(x):
    x = x - jnp.max(x, axis=-1, keepdims=True)
    x = x / 2.0
    xsrt = -jnp.sort(-x, axis=-1)
    d = x.shape[-1]
    rho = jnp.arange(1, d + 1, dtype=x.dtype)
    mean = jnp.cumsum(xsrt, axis=-1) / rho
    mean_sq = jnp.cumsum(xsrt * xsrt, axis=-1) / rho
    ss = rho * (mean_sq - mean * mean)
    delta = (1.0 - ss) / rho
    tau = mean - jnp.sqrt(jnp.maximum(delta, 0.0))
    support = jnp.sum((tau <= xsrt).astype(jnp.int32), axis=-1, keepdims=True)
    tau_star = jnp.take_along_axis(tau, support - 1, axis=-1)
    return jnp.maximum(x - tau_star, 0.0) ** 2


def _pack_level(level):
    """Parameter-only packing for one tree level (done once per call in the wrapper)."""
    n = len(level)
    fd = level[0][1].shape[-1]
    masks = jnp.stack([entmax15_lastdim(m) for (m, _, _) in level])    # (n, Fd)
    cuts = jnp.stack([c for (_, c, _) in level])                       # (n, 2, Fd)
    leafs = jnp.stack([l for (_, _, l) in level])                      # (n, 2, Fd)
    w = leafs * masks[:, None, :]                                      # fold mask into leaves
    cut_packed = jnp.transpose(cuts, (1, 0, 2)).reshape(2, n * fd)     # (2, n*Fd)
    # wf[j, i*Fd + f, 2k + l] = w[i, j, f] * (i == k) * (j == l)
    wf = jnp.einsum(
        "ijf,ik,jl->jifkl", w,
        jnp.eye(n, dtype=jnp.float32), jnp.eye(2, dtype=jnp.float32),
    ).reshape(2, n * fd, 2 * n)
    return masks, cut_packed, wf


def tree_forward(x, params):
    """NeuralDecisionTree.forward.  Returns (last_level_nodes, feature_masks)."""
    b, f0 = x.shape

    # Batch tile: multiple of 8 sublanes; pad batch so the grid divides evenly.
    block_b = min(256, ((b + 7) // 8) * 8)
    b_pad = pl.cdiv(b, block_b) * block_b
    x_p = jnp.pad(x, ((0, b_pad - b), (0, 0))) if b_pad != b else x
    grid = (b_pad // block_b,)

    level_dims = []
    feature_masks = []
    inputs = [x_p]
    in_specs = [pl.BlockSpec((block_b, f0), lambda i: (i, 0))]
    for level in params:
        n = len(level)
        fd = level[0][1].shape[-1]
        level_dims.append((n, fd))
        masks, cut_packed, wf = _pack_level(level)
        feature_masks.append([masks[i] for i in range(n)])
        inputs += [cut_packed, wf]
        in_specs += [
            pl.BlockSpec((2, n * fd), lambda i: (0, 0)),
            pl.BlockSpec((2, n * fd, 2 * n), lambda i: (0, 0, 0)),
        ]
    n_last = level_dims[-1][0]

    out = pl.pallas_call(
        _make_tree_kernel(tuple(level_dims)),
        out_shape=jax.ShapeDtypeStruct((b_pad, 2 * n_last), jnp.float32),
        grid=grid,
        in_specs=in_specs,
        out_specs=pl.BlockSpec((block_b, 2 * n_last), lambda i: (i, 0)),
        compiler_params=pltpu.CompilerParams(dimension_semantics=("parallel",)),
    )(*inputs)
    out = out[:b] if b_pad != b else out
    # self.dropout(last_level_layer_nodes): Dropout(p=0) -> identity.
    return out, feature_masks


# ----------------------------------------------------------------------------
# Deterministic synthetic parameters (matching the module's parameter shapes).
# ----------------------------------------------------------------------------
def make_stump_params(key, n_features):
    k1, k2, k3 = jax.random.split(key, 3)
    feature_mask = jax.random.uniform(k1, (n_features,), jnp.float32, 0.05, 0.95)
    cut1 = jax.random.uniform(k2, (n_features,), jnp.float32)
    # cut_points = cat([zeros(F,1), rand(F,1)], dim=1), stored transposed (2, F)
    cut = jnp.stack([jnp.zeros((n_features,), jnp.float32), cut1], axis=0)
    # leaf_responses = rand(F, 2), stored transposed (2, F)
    leaf = jax.random.uniform(k3, (2, n_features), jnp.float32)
    return feature_mask, cut, leaf


# ----------------------------------------------------------------------------
# Pure-JAX reference (mirrors the torch code op-by-op) for verification.
# ----------------------------------------------------------------------------
def stump_ref(x, mask_raw, cut, leaf):
    fm = entmax15_lastdim(mask_raw)                                   # (F,)
    w = jnp.array([1.0, 2.0], jnp.float32)
    z = x[:, :, None] * w[None, None, :] - cut.T[None, :, :]          # (B, F, 2)
    p = entmax15_lastdim(z)
    p = p * leaf.T[None, :, :]
    return jnp.sum(p * fm[None, :, None], axis=1), fm                 # (B, 2)


def tree_forward_ref(x, params):
    tree_input = x
    last = None
    for level in params:
        outs = [stump_ref(tree_input, m, c, l)[0] for (m, c, l) in level]
        layer = jnp.concatenate(outs, axis=1)
        tree_input = jnp.concatenate([x, layer], axis=1)
        last = layer
    return last


# ----------------------------------------------------------------------------
if __name__ == "__main__":
    batch, n_features, depth = 8, 16, 3

    root = jax.random.PRNGKey(0)
    kx, kp = jax.random.split(root)
    x = jax.random.normal(kx, (batch, n_features), dtype=jnp.float32)

    params = []
    key = kp
    for d in range(depth):
        f_d = n_features + (2 ** d if d > 0 else 0)
        level = []
        for _ in range(max(2 ** d, 1)):
            key, sub = jax.random.split(key)
            level.append(make_stump_params(sub, f_d))
        params.append(level)

    fwd = jax.jit(tree_forward)        # fuse param packing + single kernel launch
    out, feature_masks = fwd(x, params)
    out = jax.block_until_ready(out)

    ref = jax.block_until_ready(tree_forward_ref(x, params))
    assert out.shape == (batch, 2 * 2 ** (depth - 1)), out.shape
    max_err = float(jnp.max(jnp.abs(out - ref)))
    # Tolerance covers in-kernel MXU rounding on the f32 dots plus closed-form vs.
    # sort-based entmax differences; any structural bug produces errors >> this.
    assert max_err < 2e-2, f"mismatch vs reference: {max_err}"

    print("KERNEL_OK")
</pallas_src>

<mosaic_0001>
module attributes {stable_mosaic.version = 11 : i64} {
  func.func @kernel(%arg0: i32, %arg1: memref<8x16xf32, #tpu.memory_space<vmem>>, %arg2: memref<2x16xf32, #tpu.memory_space<vmem>>, %arg3: memref<2x16x2xf32, #tpu.memory_space<vmem>>, %arg4: memref<2x36xf32, #tpu.memory_space<vmem>>, %arg5: memref<2x36x4xf32, #tpu.memory_space<vmem>>, %arg6: memref<2x80xf32, #tpu.memory_space<vmem>>, %arg7: memref<2x80x8xf32, #tpu.memory_space<vmem>>, %arg8: memref<8x8xf32, #tpu.memory_space<vmem>>) attributes {dimension_semantics = [#tpu.dimension_semantics<parallel>], iteration_bounds = array<i64: 1>, scalar_prefetch = 0 : i64, scratch_operands = 0 : i64, tpu.core_type = #tpu.core_type<tc>, window_params = [{transform_indices = @transform_0, window_bounds = array<i64: 8, 16>}, {pipeline_mode = #tpu.pipeline_mode<synchronous>, transform_indices = @transform_1, window_bounds = array<i64: 2, 16>}, {pipeline_mode = #tpu.pipeline_mode<synchronous>, transform_indices = @transform_2, window_bounds = array<i64: 2, 16, 2>}, {pipeline_mode = #tpu.pipeline_mode<synchronous>, transform_indices = @transform_3, window_bounds = array<i64: 2, 36>}, {pipeline_mode = #tpu.pipeline_mode<synchronous>, transform_indices = @transform_4, window_bounds = array<i64: 2, 36, 4>}, {pipeline_mode = #tpu.pipeline_mode<synchronous>, transform_indices = @transform_5, window_bounds = array<i64: 2, 80>}, {pipeline_mode = #tpu.pipeline_mode<synchronous>, transform_indices = @transform_6, window_bounds = array<i64: 2, 80, 8>}, {transform_indices = @transform_7, window_bounds = array<i64: 8, 8>}]} {
    %c0 = arith.constant 0 : index
    %c0_0 = arith.constant 0 : index
    %0 = vector.load %arg1[%c0, %c0_0] : memref<8x16xf32, #tpu.memory_space<vmem>>, vector<8x16xf32>
    %c0_1 = arith.constant 0 : index
    %c0_2 = arith.constant 0 : index
    %1 = vector.load %arg2[%c0_1, %c0_2] : memref<2x16xf32, #tpu.memory_space<vmem>>, vector<2x16xf32>
    %2 = vector.extract_strided_slice %1 {offsets = [0, 0], sizes = [1, 16], strides = [1, 1]} : vector<2x16xf32> to vector<1x16xf32>
    %3 = vector.broadcast %2 : vector<1x16xf32> to vector<8x16xf32>
    %4 = arith.subf %0, %3 : vector<8x16xf32>
    %cst = arith.constant 2.000000e+00 : f32
    %5 = vector.broadcast %cst : f32 to vector<8x16xf32>
    %6 = arith.mulf %0, %5 : vector<8x16xf32>
    %7 = vector.extract_strided_slice %1 {offsets = [1, 0], sizes = [1, 16], strides = [1, 1]} : vector<2x16xf32> to vector<1x16xf32>
    %8 = vector.broadcast %7 : vector<1x16xf32> to vector<8x16xf32>
    %9 = arith.subf %6, %8 : vector<8x16xf32>
    %10 = arith.maximumf %4, %9 : vector<8x16xf32>
    %11 = arith.subf %4, %10 : vector<8x16xf32>
    %cst_3 = arith.constant 5.000000e-01 : f32
    %12 = vector.broadcast %cst_3 : f32 to vector<8x16xf32>
    %13 = arith.mulf %11, %12 : vector<8x16xf32>
    %14 = arith.subf %9, %10 : vector<8x16xf32>
    %cst_4 = arith.constant 5.000000e-01 : f32
    %15 = vector.broadcast %cst_4 : f32 to vector<8x16xf32>
    %16 = arith.mulf %14, %15 : vector<8x16xf32>
    %17 = arith.subf %13, %16 : vector<8x16xf32>
    %18 = math.absf %17 : vector<8x16xf32>
    %19 = arith.mulf %18, %18 : vector<8x16xf32>
    %cst_5 = arith.constant 2.000000e+00 : f32
    %20 = vector.broadcast %cst_5 : f32 to vector<8x16xf32>
    %21 = arith.subf %20, %19 : vector<8x16xf32>
    %cst_6 = arith.constant 2.500000e-01 : f32
    %22 = vector.broadcast %cst_6 : f32 to vector<8x16xf32>
    %23 = arith.mulf %21, %22 : vector<8x16xf32>
    %cst_7 = arith.constant 0.000000e+00 : f32
    %24 = vector.broadcast %cst_7 : f32 to vector<8x16xf32>
    %25 = arith.maximumf %23, %24 : vector<8x16xf32>
    %cst_8 = arith.constant 1.000000e+00 : f32
    %26 = vector.broadcast %cst_8 : f32 to vector<8x16xf32>
    %27 = arith.cmpf ole, %18, %26 : vector<8x16xf32>
    %cst_9 = arith.constant -5.000000e-01 : f32
    %28 = vector.broadcast %cst_9 : f32 to vector<8x16xf32>
    %29 = arith.mulf %28, %18 : vector<8x16xf32>
    %30 = math.sqrt %25 : vector<8x16xf32>
    %31 = arith.subf %29, %30 : vector<8x16xf32>
    %cst_10 = arith.constant -1.000000e+00 : f32
    %32 = vector.broadcast %cst_10 : f32 to vector<8x16xf32>
    %33 = arith.select %27, %31, %32 : vector<8x16xi1>, vector<8x16xf32>
    %34 = arith.subf %13, %33 : vector<8x16xf32>
    %cst_11 = arith.constant 0.000000e+00 : f32
    %35 = vector.broadcast %cst_11 : f32 to vector<8x16xf32>
    %36 = arith.maximumf %34, %35 : vector<8x16xf32>
    %37 = arith.mulf %36, %36 : vector<8x16xf32>
    %38 = arith.subf %16, %33 : vector<8x16xf32>
    %cst_12 = arith.constant 0.000000e+00 : f32
    %39 = vector.broadcast %cst_12 : f32 to vector<8x16xf32>
    %40 = arith.maximumf %38, %39 : vector<8x16xf32>
    %41 = arith.mulf %40, %40 : vector<8x16xf32>
    %c0_13 = arith.constant 0 : index
    %c0_14 = arith.constant 0 : index
    %c0_15 = arith.constant 0 : index
    %42 = vector.load %arg3[%c0_13, %c0_14, %c0_15] : memref<2x16x2xf32, #tpu.memory_space<vmem>>, vector<1x16x2xf32>
    %43 = vector.shape_cast %42 : vector<1x16x2xf32> to vector<16x2xf32>
    %cst_16 = arith.constant dense<0.000000e+00> : vector<8x2xf32>
    %44 = tpu.matmul %37, %43, %cst_16 {dimension_numbers = #tpu.dot_dimension_numbers<[1], [0], [0], [1], [0, 0, 1, 1], [], []>} : vector<8x16xf32>, vector<16x2xf32>, vector<8x2xf32> -> vector<8x2xf32>
    %c1 = arith.constant 1 : index
    %c0_17 = arith.constant 0 : index
    %c0_18 = arith.constant 0 : index
    %45 = vector.load %arg3[%c1, %c0_17, %c0_18] : memref<2x16x2xf32, #tpu.memory_space<vmem>>, vector<1x16x2xf32>
    %46 = vector.shape_cast %45 : vector<1x16x2xf32> to vector<16x2xf32>
    %cst_19 = arith.constant dense<0.000000e+00> : vector<8x2xf32>
    %47 = tpu.matmul %41, %46, %cst_19 {dimension_numbers = #tpu.dot_dimension_numbers<[1], [0], [0], [1], [0, 0, 1, 1], [], []>} : vector<8x16xf32>, vector<16x2xf32>, vector<8x2xf32> -> vector<8x2xf32>
    %48 = arith.addf %44, %47 : vector<8x2xf32>
    %49 = tpu.concatenate %0, %48 in 1 : vector<8x16xf32>, vector<8x2xf32> -> vector<8x18xf32>
    %50 = tpu.concatenate %49, %49 in 1 : vector<8x18xf32>, vector<8x18xf32> -> vector<8x36xf32>
    %c0_20 = arith.constant 0 : index
    %c0_21 = arith.constant 0 : index
    %51 = vector.load %arg4[%c0_20, %c0_21] : memref<2x36xf32, #tpu.memory_space<vmem>>, vector<2x36xf32>
    %52 = vector.extract_strided_slice %51 {offsets = [0, 0], sizes = [1, 36], strides = [1, 1]} : vector<2x36xf32> to vector<1x36xf32>
    %53 = vector.broadcast %52 : vector<1x36xf32> to vector<8x36xf32>
    %54 = arith.subf %50, %53 : vector<8x36xf32>
    %cst_22 = arith.constant 2.000000e+00 : f32
    %55 = vector.broadcast %cst_22 : f32 to vector<8x36xf32>
    %56 = arith.mulf %50, %55 : vector<8x36xf32>
    %57 = vector.extract_strided_slice %51 {offsets = [1, 0], sizes = [1, 36], strides = [1, 1]} : vector<2x36xf32> to vector<1x36xf32>
    %58 = vector.broadcast %57 : vector<1x36xf32> to vector<8x36xf32>
    %59 = arith.subf %56, %58 : vector<8x36xf32>
    %60 = arith.maximumf %54, %59 : vector<8x36xf32>
    %61 = arith.subf %54, %60 : vector<8x36xf32>
    %cst_23 = arith.constant 5.000000e-01 : f32
    %62 = vector.broadcast %cst_23 : f32 to vector<8x36xf32>
    %63 = arith.mulf %61, %62 : vector<8x36xf32>
    %64 = arith.subf %59, %60 : vector<8x36xf32>
    %cst_24 = arith.constant 5.000000e-01 : f32
    %65 = vector.broadcast %cst_24 : f32 to vector<8x36xf32>
    %66 = arith.mulf %64, %65 : vector<8x36xf32>
    %67 = arith.subf %63, %66 : vector<8x36xf32>
    %68 = math.absf %67 : vector<8x36xf32>
    %69 = arith.mulf %68, %68 : vector<8x36xf32>
    %cst_25 = arith.constant 2.000000e+00 : f32
    %70 = vector.broadcast %cst_25 : f32 to vector<8x36xf32>
    %71 = arith.subf %70, %69 : vector<8x36xf32>
    %cst_26 = arith.constant 2.500000e-01 : f32
    %72 = vector.broadcast %cst_26 : f32 to vector<8x36xf32>
    %73 = arith.mulf %71, %72 : vector<8x36xf32>
    %cst_27 = arith.constant 0.000000e+00 : f32
    %74 = vector.broadcast %cst_27 : f32 to vector<8x36xf32>
    %75 = arith.maximumf %73, %74 : vector<8x36xf32>
    %cst_28 = arith.constant 1.000000e+00 : f32
    %76 = vector.broadcast %cst_28 : f32 to vector<8x36xf32>
    %77 = arith.cmpf ole, %68, %76 : vector<8x36xf32>
    %cst_29 = arith.constant -5.000000e-01 : f32
    %78 = vector.broadcast %cst_29 : f32 to vector<8x36xf32>
    %79 = arith.mulf %78, %68 : vector<8x36xf32>
    %80 = math.sqrt %75 : vector<8x36xf32>
    %81 = arith.subf %79, %80 : vector<8x36xf32>
    %cst_30 = arith.constant -1.000000e+00 : f32
    %82 = vector.broadcast %cst_30 : f32 to vector<8x36xf32>
    %83 = arith.select %77, %81, %82 : vector<8x36xi1>, vector<8x36xf32>
    %84 = arith.subf %63, %83 : vector<8x36xf32>
    %cst_31 = arith.constant 0.000000e+00 : f32
    %85 = vector.broadcast %cst_31 : f32 to vector<8x36xf32>
    %86 = arith.maximumf %84, %85 : vector<8x36xf32>
    %87 = arith.mulf %86, %86 : vector<8x36xf32>
    %88 = arith.subf %66, %83 : vector<8x36xf32>
    %cst_32 = arith.constant 0.000000e+00 : f32
    %89 = vector.broadcast %cst_32 : f32 to vector<8x36xf32>
    %90 = arith.maximumf %88, %89 : vector<8x36xf32>
    %91 = arith.mulf %90, %90 : vector<8x36xf32>
    %c0_33 = arith.constant 0 : index
    %c0_34 = arith.constant 0 : index
    %c0_35 = arith.constant 0 : index
    %92 = vector.load %arg5[%c0_33, %c0_34, %c0_35] : memref<2x36x4xf32, #tpu.memory_space<vmem>>, vector<1x36x4xf32>
    %93 = vector.shape_cast %92 : vector<1x36x4xf32> to vector<36x4xf32>
    %cst_36 = arith.constant dense<0.000000e+00> : vector<8x4xf32>
    %94 = tpu.matmul %87, %93, %cst_36 {dimension_numbers = #tpu.dot_dimension_numbers<[1], [0], [0], [1], [0, 0, 1, 1], [], []>} : vector<8x36xf32>, vector<36x4xf32>, vector<8x4xf32> -> vector<8x4xf32>
    %c1_37 = arith.constant 1 : index
    %c0_38 = arith.constant 0 : index
    %c0_39 = arith.constant 0 : index
    %95 = vector.load %arg5[%c1_37, %c0_38, %c0_39] : memref<2x36x4xf32, #tpu.memory_space<vmem>>, vector<1x36x4xf32>
    %96 = vector.shape_cast %95 : vector<1x36x4xf32> to vector<36x4xf32>
    %cst_40 = arith.constant dense<0.000000e+00> : vector<8x4xf32>
    %97 = tpu.matmul %91, %96, %cst_40 {dimension_numbers = #tpu.dot_dimension_numbers<[1], [0], [0], [1], [0, 0, 1, 1], [], []>} : vector<8x36xf32>, vector<36x4xf32>, vector<8x4xf32> -> vector<8x4xf32>
    %98 = arith.addf %94, %97 : vector<8x4xf32>
    %99 = tpu.concatenate %0, %98 in 1 : vector<8x16xf32>, vector<8x4xf32> -> vector<8x20xf32>
    %100 = tpu.concatenate %99, %99, %99, %99 in 1 : vector<8x20xf32>, vector<8x20xf32>, vector<8x20xf32>, vector<8x20xf32> -> vector<8x80xf32>
    %c0_41 = arith.constant 0 : index
    %c0_42 = arith.constant 0 : index
    %101 = vector.load %arg6[%c0_41, %c0_42] : memref<2x80xf32, #tpu.memory_space<vmem>>, vector<2x80xf32>
    %102 = vector.extract_strided_slice %101 {offsets = [0, 0], sizes = [1, 80], strides = [1, 1]} : vector<2x80xf32> to vector<1x80xf32>
    %103 = vector.broadcast %102 : vector<1x80xf32> to vector<8x80xf32>
    %104 = arith.subf %100, %103 : vector<8x80xf32>
    %cst_43 = arith.constant 2.000000e+00 : f32
    %105 = vector.broadcast %cst_43 : f32 to vector<8x80xf32>
    %106 = arith.mulf %100, %105 : vector<8x80xf32>
    %107 = vector.extract_strided_slice %101 {offsets = [1, 0], sizes = [1, 80], strides = [1, 1]} : vector<2x80xf32> to vector<1x80xf32>
    %108 = vector.broadcast %107 : vector<1x80xf32> to vector<8x80xf32>
    %109 = arith.subf %106, %108 : vector<8x80xf32>
    %110 = arith.maximumf %104, %109 : vector<8x80xf32>
    %111 = arith.subf %104, %110 : vector<8x80xf32>
    %cst_44 = arith.constant 5.000000e-01 : f32
    %112 = vector.broadcast %cst_44 : f32 to vector<8x80xf32>
    %113 = arith.mulf %111, %112 : vector<8x80xf32>
    %114 = arith.subf %109, %110 : vector<8x80xf32>
    %cst_45 = arith.constant 5.000000e-01 : f32
    %115 = vector.broadcast %cst_45 : f32 to vector<8x80xf32>
    %116 = arith.mulf %114, %115 : vector<8x80xf32>
    %117 = arith.subf %113, %116 : vector<8x80xf32>
    %118 = math.absf %117 : vector<8x80xf32>
    %119 = arith.mulf %118, %118 : vector<8x80xf32>
    %cst_46 = arith.constant 2.000000e+00 : f32
    %120 = vector.broadcast %cst_46 : f32 to vector<8x80xf32>
    %121 = arith.subf %120, %119 : vector<8x80xf32>
    %cst_47 = arith.constant 2.500000e-01 : f32
    %122 = vector.broadcast %cst_47 : f32 to vector<8x80xf32>
    %123 = arith.mulf %121, %122 : vector<8x80xf32>
    %cst_48 = arith.constant 0.000000e+00 : f32
    %124 = vector.broadcast %cst_48 : f32 to vector<8x80xf32>
    %125 = arith.maximumf %123, %124 : vector<8x80xf32>
    %cst_49 = arith.constant 1.000000e+00 : f32
    %126 = vector.broadcast %cst_49 : f32 to vector<8x80xf32>
    %127 = arith.cmpf ole, %118, %126 : vector<8x80xf32>
    %cst_50 = arith.constant -5.000000e-01 : f32
    %128 = vector.broadcast %cst_50 : f32 to vector<8x80xf32>
    %129 = arith.mulf %128, %118 : vector<8x80xf32>
    %130 = math.sqrt %125 : vector<8x80xf32>
    %131 = arith.subf %129, %130 : vector<8x80xf32>
    %cst_51 = arith.constant -1.000000e+00 : f32
    %132 = vector.broadcast %cst_51 : f32 to vector<8x80xf32>
    %133 = arith.select %127, %131, %132 : vector<8x80xi1>, vector<8x80xf32>
    %134 = arith.subf %113, %133 : vector<8x80xf32>
    %cst_52 = arith.constant 0.000000e+00 : f32
    %135 = vector.broadcast %cst_52 : f32 to vector<8x80xf32>
    %136 = arith.maximumf %134, %135 : vector<8x80xf32>
    %137 = arith.mulf %136, %136 : vector<8x80xf32>
    %138 = arith.subf %116, %133 : vector<8x80xf32>
    %cst_53 = arith.constant 0.000000e+00 : f32
    %139 = vector.broadcast %cst_53 : f32 to vector<8x80xf32>
    %140 = arith.maximumf %138, %139 : vector<8x80xf32>
    %141 = arith.mulf %140, %140 : vector<8x80xf32>
    %c0_54 = arith.constant 0 : index
    %c0_55 = arith.constant 0 : index
    %c0_56 = arith.constant 0 : index
    %142 = vector.load %arg7[%c0_54, %c0_55, %c0_56] : memref<2x80x8xf32, #tpu.memory_space<vmem>>, vector<1x80x8xf32>
    %143 = vector.shape_cast %142 : vector<1x80x8xf32> to vector<80x8xf32>
    %cst_57 = arith.constant dense<0.000000e+00> : vector<8x8xf32>
    %144 = tpu.matmul %137, %143, %cst_57 {dimension_numbers = #tpu.dot_dimension_numbers<[1], [0], [0], [1], [0, 0, 1, 1], [], []>} : vector<8x80xf32>, vector<80x8xf32>, vector<8x8xf32> -> vector<8x8xf32>
    %c1_58 = arith.constant 1 : index
    %c0_59 = arith.constant 0 : index
    %c0_60 = arith.constant 0 : index
    %145 = vector.load %arg7[%c1_58, %c0_59, %c0_60] : memref<2x80x8xf32, #tpu.memory_space<vmem>>, vector<1x80x8xf32>
    %146 = vector.shape_cast %145 : vector<1x80x8xf32> to vector<80x8xf32>
    %cst_61 = arith.constant dense<0.000000e+00> : vector<8x8xf32>
    %147 = tpu.matmul %141, %146, %cst_61 {dimension_numbers = #tpu.dot_dimension_numbers<[1], [0], [0], [1], [0, 0, 1, 1], [], []>} : vector<8x80xf32>, vector<80x8xf32>, vector<8x8xf32> -> vector<8x8xf32>
    %148 = arith.addf %144, %147 : vector<8x8xf32>
    %c0_62 = arith.constant 0 : index
    %c0_63 = arith.constant 0 : index
    %149 = vector.load %arg8[%c0_62, %c0_63] : memref<8x8xf32, #tpu.memory_space<vmem>>, vector<8x8xf32>
    tpu.vector_store %arg8[%c0_62, %c0_63], %148 {strides = array<i32>} : memref<8x8xf32, #tpu.memory_space<vmem>>, vector<8x8xf32>,
    return
  }
  func.func @transform_0(%arg0: i32) -> (i32, i32) {
    %c0_i32 = arith.constant 0 : i32
    %c0_i32_0 = arith.constant 0 : i32
    return %arg0, %c0_i32 : i32, i32
  }
  func.func @transform_1(%arg0: i32) -> (i32, i32) {
    %c0_i32 = arith.constant 0 : i32
    %c0_i32_0 = arith.constant 0 : i32
    %c0_i32_1 = arith.constant 0 : i32
    return %c0_i32, %c0_i32_0 : i32, i32
  }
  func.func @transform_2(%arg0: i32) -> (i32, i32, i32) {
    %c0_i32 = arith.constant 0 : i32
    %c0_i32_0 = arith.constant 0 : i32
    %c0_i32_1 = arith.constant 0 : i32
    %c0_i32_2 = arith.constant 0 : i32
    return %c0_i32, %c0_i32_0, %c0_i32_1 : i32, i32, i32
  }
  func.func @transform_3(%arg0: i32) -> (i32, i32) {
    %c0_i32 = arith.constant 0 : i32
    %c0_i32_0 = arith.constant 0 : i32
    %c0_i32_1 = arith.constant 0 : i32
    return %c0_i32, %c0_i32_0 : i32, i32
  }
  func.func @transform_4(%arg0: i32) -> (i32, i32, i32) {
    %c0_i32 = arith.constant 0 : i32
    %c0_i32_0 = arith.constant 0 : i32
    %c0_i32_1 = arith.constant 0 : i32
    %c0_i32_2 = arith.constant 0 : i32
    return %c0_i32, %c0_i32_0, %c0_i32_1 : i32, i32, i32
  }
  func.func @transform_5(%arg0: i32) -> (i32, i32) {
    %c0_i32 = arith.constant 0 : i32
    %c0_i32_0 = arith.constant 0 : i32
    %c0_i32_1 = arith.constant 0 : i32
    return %c0_i32, %c0_i32_0 : i32, i32
  }
  func.func @transform_6(%arg0: i32) -> (i32, i32, i32) {
    %c0_i32 = arith.constant 0 : i32
    %c0_i32_0 = arith.constant 0 : i32
    %c0_i32_1 = arith.constant 0 : i32
    %c0_i32_2 = arith.constant 0 : i32
    return %c0_i32, %c0_i32_0, %c0_i32_1 : i32, i32, i32
  }
  func.func @transform_7(%arg0: i32) -> (i32, i32) {
    %c0_i32 = arith.constant 0 : i32
    %c0_i32_0 = arith.constant 0 : i32
    return %arg0, %c0_i32 : i32, i32
  }
}

</mosaic_0001>

<bundles_post_ra>
// kernel: tree_forward.1
= control target key start
LH: loop header
LB: loop body
LE: loop exit
PB: predicated region body
PF: predicated region fallthrough
CT: control target
= control target key end

     0   :  { %v29_v2 = vlaneseq  ;;  %v868_v3 = vmov 0.0   ;;  %s1107_s0 = inlined_call_operand.vmem [shape: f32[8,16], index: 0, kind: input, shape index: {}]   ;;  %s1108_s1 = inlined_call_operand.vmem [shape: f32[2,16], index: 1, kind: input, shape index: {}]   ;;  %s1109_s2 = inlined_call_operand.vmem [shape: f32[2,16,2], index: 2, kind: input, shape index: {}]   ;;  %s1110_s3 = inlined_call_operand.vmem [shape: f32[2,36], index: 3, kind: input, shape index: {}]   ;;  %s1111_s4 = inlined_call_operand.vmem [shape: f32[2,36,4], index: 4, kind: input, shape index: {}]   ;;  %s1112_s5 = inlined_call_operand.vmem [shape: f32[2,80], index: 5, kind: input, shape index: {}]   ;;  %s1113_s6 = inlined_call_operand.vmem [shape: f32[2,80,8], index: 6, kind: input, shape index: {}]   ;;  %s1114_s7 = inlined_call_operand.hbm [shape: f32[8,8], index: 7, kind: output, shape index: {}]  }
   0x1   :  { %v682_v0 = vld [vmem:[%s1109_s2 + $0x18] sm:$0xff]  ;;  %v69_v1 = vld [vmem:[%s1109_s2 + $0x8] sm:$0xff]  ;;  %746 = vmatprep.subr.mxu0 %v868_v3  ;;  %753 = vmatprep.subr.mxu1 %v868_v3  ;;  %v681_v4 = vld [vmem:[%s1109_s2 + $0x10] sm:$0xff] }
   0x2   :  { %v930_v5 = vld [vmem:[%s1107_s0] sm:$0xff]  ;;  %747 = vmatpush3.msra.mxu0 %v682_v0  ;;  %754 = vmatpush3.msra.mxu1 %v69_v1  ;;  %v30_v7 = vshrl.u32 %v29_v2, 7 }
   0x3   :  { %v68_v6 = vld [vmem:[%s1109_s2] sm:$0xff] }
   0x4   :  { %12 = vsyncpa [#allocation3], 0  ;;  %748 = vmatprep.subr.mxu0 %v868_v3  ;;  %755 = vmatprep.subr.mxu1 %v868_v3  ;;  %v28_v8 = vld [vmem:[%s1108_s1] sm:$0x3]  ;;  %vm869_vm0 = vmmov 0   ;;  %v942_v9 = vsub.s32 0, %v30_v7 }
   0x5   :  { %749 = vmatpush3.msra.mxu0 %v681_v4  ;;  %750 = vmatprep.mubr.msk.f32.mxu0 %vm869_vm0, %v868_v3  ;;  %v34_v10 = vmul.f32 2.0, %v930_v5  ;;  %v945_v11 = vsub.s32 1, %v30_v7  ;;  %vm73_vm4 = vcmask 130048   ;;  %s870_s0 = smov 16   ;;  %s871_s1 = smov 18   ;;  %vm286_vm5 = vcmask 1043456  }
   0x6   :  { %756 = vmatpush3.msra.mxu1 %v68_v6  ;;  %757 = vmatprep.mubr.msk.f32.mxu1 %vm869_vm0, %v868_v3  ;;  %v32_v12 = vrot.slane %v28_v8, %v942_v9  ;;  %v689_v48 = vld [vmem:[%s1111_s4 + $0x48] sm:$0xf]  ;;  %v275_v49 = vld [vmem:[%s1111_s4 + $0x20] sm:$0xf]  ;;  %v274_v51 = vld [vmem:[%s1111_s4 + $0x18] sm:$0xff]  ;;  %vm229_vm6 = vcmask 146432  }
   0x7   :  { %v38_v13 = vrot.slane %v28_v8, %v945_v11  ;;  %760 = vmatprep.subr.mxu0 %v868_v3  ;;  %773 = vmatprep.subr.mxu1 %v868_v3  ;;  %v688_v50 = vld [vmem:[%s1111_s4 + $0x40] sm:$0xff]  ;;  %v687_v52 = vld [vmem:[%s1111_s4 + $0x38] sm:$0xff]  ;;  %v273_v53 = vld [vmem:[%s1111_s4 + $0x10] sm:$0xff]  ;;  %vm282_vm10 = vcmask 293888   ;;  %s874_s11 = smov 60   ;;  %vm451_vm11 = vcmask 162816  }
   0x8   :  { %v33_v14 = vsub.f32 %v930_v5, %v32_v12  ;;  %v686_v54 = vld [vmem:[%s1111_s4 + $0x30] sm:$0xff]  ;;  %v272_v55 = vld [vmem:[%s1111_s4 + $0x8] sm:$0xff]  ;;  %v271_v57 = vld [vmem:[%s1111_s4] sm:$0xff]  ;;  %vm453_vm12 = vcmask 326656   ;;  %vm455_vm13 = vcmask 490496  }
   0x9   :  { %v39_v15 = vsub.f32 %v34_v10, %v38_v13  ;;  %v685_v56 = vld [vmem:[%s1111_s4 + $0x28] sm:$0xff]  ;;  %v231_v58 = vld [vmem:[%s1110_s3] sm:$0x3]  ;;  %s872_s3 = smov 40   ;;  %s873_s4 = smov 20  }
   0xa   :  { %v235_v59 = vrot.slane %v231_v58, %v942_v9  ;;  %v241_v60 = vrot.slane %v231_v58, %v945_v11 }
   0xb   :  { %v40_v16 = vmax.f32 %v33_v14, %v39_v15 }
   0xd   :  { %v41_v17 = vsub.f32 %v33_v14, %v40_v16  ;;  %v43_v18 = vsub.f32 %v39_v15, %v40_v16 }
   0xf   :  { %v42_v19 = vmul.f32 0.5, %v41_v17  ;;  %v44_v20 = vmul.f32 0.5, %v43_v18 }
  0x11   :  { %v45_v21 = vsub.f32 %v42_v19, %v44_v20 }
  0x13   :  { %v46_v22 = vand.u32 2147483647, %v45_v21 }
  0x15   :  { %v47_v23 = vmul.f32 %v46_v22, %v46_v22  ;;  %v52_v29 = vmul.f32 -0.5, %v46_v22  ;;  %vm51_vm3 = vcmp.le.f32.partialorder %v46_v22, 1.0 }
  0x17   :  { %v48_v24 = vsub.f32 2.0, %v47_v23 }
  0x19   :  { %v49_v25 = vmul.f32 0.25, %v48_v24 }
  0x1b   :  { %v50_v26 = vmax.f32 %v49_v25, 0.0 }
  0x1d   :  { %840 = vrsqrt.f32 %v50_v26  ;;  %vm55_vm1 = vcmp.eq.f32.partialorder %v50_v26, inf  ;;  %v58_v28 = vand.u32 2147483648, %v50_v26  ;;  %vm57_vm2 = vcmp.eq.f32.partialorder %v50_v26, 0.0 }
  0x2a   :  { %v841_v27 = vpop.eup %840 }
  0x2b   :  { %v54_v30 = vmul.f32 %v841_v27, %v50_v26 }
  0x2d   :  { %v56_v31 = vsel %vm55_vm1, %v50_v26, %v54_v30  ;;  %vm518_vm1 = vcmask 654336  }
  0x2e   :  { %v59_v32 = vsel %vm57_vm2, %v58_v28, %v56_v31  ;;  %vm665_vm2 = vcmask 64512  }
  0x2f   :  { %v60_v33 = vsub.f32 %v52_v29, %v59_v32 }
  0x31   :  { %v61_v34 = vsel %vm51_vm3, %v60_v33, -1.0 }
  0x32   :  { %v65_v35 = vsub.f32 %v44_v20, %v61_v34  ;;  %v62_v36 = vsub.f32 %v42_v19, %v61_v34 }
  0x34   :  { %v66_v37 = vmax.f32 %v65_v35, 0.0  ;;  %v63_v38 = vmax.f32 %v62_v36, 0.0 }
  0x36   :  { %v67_v39 = vmul.f32 %v66_v37, %v66_v37  ;;  %v64_v40 = vmul.f32 %v63_v38, %v63_v38  ;;  %v703_v38 = vld [vmem:[%s1113_s6 + $0x98] sm:$0xff] }
  0x38   :  { %751 = vmatmul.mubr.msk.f32.vlgmr.msra.gmra.mxu0 %vm73_vm4, %v67_v39  ;;  %758 = vmatmul.mubr.msk.f32.vlgmr.msra.gmra.mxu1 %vm73_vm4, %v64_v40  ;;  %v506_v39 = vld [vmem:[%s1113_s6 + $0x48] sm:$0xff]  ;;  %v505_v40 = vld [vmem:[%s1113_s6 + $0x40] sm:$0xff] }
  0x39   :  { %770 = vmatprep.mubr.msk.f32.mxu0 %vm869_vm0, %v868_v3  ;;  %783 = vmatprep.mubr.msk.f32.mxu1 %vm869_vm0, %v868_v3 }
  0x3a   :  { %761 = vmatpush3.msk.msra.mxu0 %vm286_vm5, %v689_v48  ;;  %774 = vmatpush3.msk.msra.mxu1 %vm286_vm5, %v275_v49  ;;  %v501_v48 = vld [vmem:[%s1113_s6 + $0x20] sm:$0xff]  ;;  %v697_v49 = vld [vmem:[%s1113_s6 + $0x68] sm:$0xff] }
  0x3b   :  { %762 = vmatprep.subr.mxu0 %v868_v3  ;;  %775 = vmatprep.subr.mxu1 %v868_v3 }
  0x3c   :  { %763 = vmatpush3.msra.mxu0 %v688_v50  ;;  %776 = vmatpush3.msra.mxu1 %v274_v51  ;;  %v500_v50 = vld [vmem:[%s1113_s6 + $0x18] sm:$0xff]  ;;  %v696_v51 = vld [vmem:[%s1113_s6 + $0x60] sm:$0xff] }
  0x3d   :  { %764 = vmatprep.subr.mxu0 %v868_v3  ;;  %777 = vmatprep.subr.mxu1 %v868_v3 }
  0x3e   :  { %765 = vmatpush3.msra.mxu0 %v687_v52  ;;  %778 = vmatpush3.msra.mxu1 %v273_v53  ;;  %v499_v52 = vld [vmem:[%s1113_s6 + $0x10] sm:$0xff]  ;;  %v695_v53 = vld [vmem:[%s1113_s6 + $0x58] sm:$0xff] }
  0x3f   :  { %766 = vmatprep.subr.mxu0 %v868_v3  ;;  %779 = vmatprep.subr.mxu1 %v868_v3 }
  0x40   :  { %767 = vmatpush3.msra.mxu0 %v686_v54  ;;  %780 = vmatpush3.msra.mxu1 %v272_v55  ;;  %v498_v54 = vld [vmem:[%s1113_s6 + $0x8] sm:$0xff]  ;;  %v694_v55 = vld [vmem:[%s1113_s6 + $0x50] sm:$0xff] }
  0x41   :  { %768 = vmatprep.subr.mxu0 %v868_v3  ;;  %781 = vmatprep.subr.mxu1 %v868_v3 }
  0x42   :  { %769 = vmatpush3.msra.mxu0 %v685_v56  ;;  %782 = vmatpush3.msra.mxu1 %v271_v57  ;;  %v497_v56 = vld [vmem:[%s1113_s6] sm:$0xff] }
  0x43   :  { %786 = vmatprep.subr.mxu0 %v868_v3  ;;  %809 = vmatprep.subr.mxu1 %v868_v3 }
  0xf8   :  { %v143_v41 = vpop.f32.mrf.mxu0  ;;  %v216_v42 = vpop.f32.mrf.mxu1 }
  0xf9   :  { %v217_v43 = vadd.f32 %v216_v42, %v143_v41  ;;  %v701_v41 = vld [vmem:[%s1113_s6 + $0x88] sm:$0xff]  ;;  %v504_v42 = vld [vmem:[%s1113_s6 + $0x38] sm:$0xff] }
  0xfa   :  { %v752_v44 = vpop.f32.mrf.mxu0  ;;  %v759_v45 = vpop.f32.mrf.mxu1 }
  0xfb   :  { %221 = vrot.lane.b32.xlu0 %v217_v43, %s870_s0  ;;  %v700_v43 = vld [vmem:[%s1113_s6 + $0x80] sm:$0xff]  ;;  %v503_v44 = vld [vmem:[%s1113_s6 + $0x30] sm:$0xff]  ;;  %v699_v45 = vld [vmem:[%s1113_s6 + $0x78] sm:$0xff] }
 0x16d   :  { %v222_v46 = vpop.permute.xlu0 %221 }
 0x16e   :  { %v224_v47 = vsel %vm73_vm4, %v930_v5, %v222_v46  ;;  %v502_v46 = vld [vmem:[%s1113_s6 + $0x28] sm:$0xff] }
 0x16f   :  { %226 = vrot.lane.b32.xlu0 %v224_v47, %s871_s1 }
 0x1e1   :  { %v227_v61 = vpop.permute.xlu0 %226 }
 0x1e2   :  { %v230_v62 = vsel %vm229_vm6, %v224_v47, %v227_v61  ;;  %v698_v47 = vld [vmem:[%s1113_s6 + $0x70] sm:$0xff] }
 0x1e3   :  { %v237_v63 = vmul.f32 2.0, %v230_v62  ;;  %v236_v0 = vsub.f32 %v230_v62, %v235_v59 }
 0x1e5   :  { %v242_v1 = vsub.f32 %v237_v63, %v241_v60 }
 0x1e7   :  { %v243_v2 = vmax.f32 %v236_v0, %v242_v1 }
 0x1e9   :  { %v244_v4 = vsub.f32 %v236_v0, %v243_v2  ;;  %v246_v6 = vsub.f32 %v242_v1, %v243_v2 }
 0x1eb   :  { %v245_v7 = vmul.f32 0.5, %v244_v4  ;;  %v247_v8 = vmul.f32 0.5, %v246_v6 }
 0x1ed   :  { %v248_v10 = vsub.f32 %v245_v7, %v247_v8 }
 0x1ef   :  { %v249_v12 = vand.u32 2147483647, %v248_v10 }
 0x1f1   :  { %v250_v13 = vmul.f32 %v249_v12, %v249_v12  ;;  %v255_v20 = vmul.f32 -0.5, %v249_v12  ;;  %vm254_vm9 = vcmp.le.f32.partialorder %v249_v12, 1.0 }
 0x1f3   :  { %v251_v14 = vsub.f32 2.0, %v250_v13 }
 0x1f5   :  { %v252_v15 = vmul.f32 0.25, %v251_v14 }
 0x1f7   :  { %v253_v16 = vmax.f32 %v252_v15, 0.0 }
 0x1f9   :  { %842 = vrsqrt.f32 %v253_v16  ;;  %vm258_vm7 = vcmp.eq.f32.partialorder %v253_v16, inf  ;;  %v261_v19 = vand.u32 2147483648, %v253_v16  ;;  %vm260_vm8 = vcmp.eq.f32.partialorder %v253_v16, 0.0 }
 0x206   :  { %v843_v17 = vpop.eup %842 }
 0x207   :  { %v257_v18 = vmul.f32 %v843_v17, %v253_v16 }
 0x209   :  { %v259_v21 = vsel %vm258_vm7, %v253_v16, %v257_v18 }
 0x20a   :  { %v262_v22 = vsel %vm260_vm8, %v261_v19, %v259_v21 }
 0x20b   :  { %v263_v23 = vsub.f32 %v255_v20, %v262_v22 }
 0x20d   :  { %v264_v24 = vsel %vm254_vm9, %v263_v23, -1.0 }
 0x20e   :  { %v265_v25 = vsub.f32 %v245_v7, %v264_v24  ;;  %v268_v26 = vsub.f32 %v247_v8, %v264_v24 }
 0x210   :  { %v266_v27 = vmax.f32 %v265_v25, 0.0  ;;  %v269_v28 = vmax.f32 %v268_v26, 0.0 }
 0x212   :  { %v267_v29 = vmul.f32 %v266_v27, %v266_v27  ;;  %v270_v30 = vmul.f32 %v269_v28, %v269_v28 }
 0x214   :  { %771 = vmatmul.mubr.msk.f32.vlgmr.msra.gmra.mxu0 %vm282_vm10, %v270_v30  ;;  %784 = vmatmul.mubr.msk.f32.vlgmr.msra.gmra.mxu1 %vm282_vm10, %v267_v29 }
 0x215   :  { %806 = vmatprep.mubr.msk.f32.mxu0 %vm869_vm0, %v868_v3  ;;  %829 = vmatprep.mubr.msk.f32.mxu1 %vm869_vm0, %v868_v3 }
 0x216   :  { %787 = vmatpush3.msra.mxu0 %v703_v38  ;;  %810 = vmatpush3.msra.mxu1 %v506_v39 }
 0x217   :  { %788 = vmatprep.subr.mxu0 %v868_v3  ;;  %811 = vmatprep.subr.mxu1 %v868_v3 }
 0x218   :  { %812 = vmatpush3.msra.mxu1 %v505_v40 }
 0x219   :  { %813 = vmatprep.subr.mxu1 %v868_v3 }
 0x21a   :  { %814 = vmatpush3.msra.mxu1 %v504_v42 }
 0x21b   :  { %815 = vmatprep.subr.mxu1 %v868_v3 }
 0x21c   :  { %816 = vmatpush3.msra.mxu1 %v503_v44 }
 0x21d   :  { %817 = vmatprep.subr.mxu1 %v868_v3 }
 0x21e   :  { %818 = vmatpush3.msra.mxu1 %v502_v46 }
 0x21f   :  { %819 = vmatprep.subr.mxu1 %v868_v3 }
 0x220   :  { %820 = vmatpush3.msra.mxu1 %v501_v48 }
 0x221   :  { %821 = vmatprep.subr.mxu1 %v868_v3 }
 0x222   :  { %822 = vmatpush3.msra.mxu1 %v500_v50 }
 0x223   :  { %823 = vmatprep.subr.mxu1 %v868_v3 }
 0x224   :  { %824 = vmatpush3.msra.mxu1 %v499_v52 }
 0x225   :  { %825 = vmatprep.subr.mxu1 %v868_v3 }
 0x226   :  { %826 = vmatpush3.msra.mxu1 %v498_v54 }
 0x227   :  { %827 = vmatprep.subr.mxu1 %v868_v3 }
 0x228   :  { %828 = vmatpush3.msra.mxu1 %v497_v56 }
 0x2d4   :  { %v356_v31 = vpop.f32.mrf.mxu0  ;;  %v432_v32 = vpop.f32.mrf.mxu1 }
 0x2d5   :  { %v433_v33 = vadd.f32 %v432_v32, %v356_v31 }
 0x2d6   :  { %v772_v34 = vpop.f32.mrf.mxu0  ;;  %v785_v35 = vpop.f32.mrf.mxu1 }
 0x2d7   :  { %437 = vrot.lane.b32.xlu1 %v433_v33, %s870_s0 }
 0x349   :  { %v438_v36 = vpop.permute.xlu1 %437 }
 0x34a   :  { %v1015_v37 = vsel %vm73_vm4, %v930_v5, %v438_v36  ;;  %v702_v5 = vld [vmem:[%s1113_s6 + $0x90] sm:$0xff] }
 0x34b   :  { %445 = vrot.lane.b32.xlu0 %v1015_v37, %s872_s3  ;;  %442 = vrot.lane.b32.xlu1 %v1015_v37, %s873_s4 }
 0x34c   :  { %789 = vmatpush3.msra.mxu0 %v702_v5 }
 0x34d   :  { %790 = vmatprep.subr.mxu0 %v868_v3 }
 0x34e   :  { %791 = vmatpush3.msra.mxu0 %v701_v41 }
 0x34f   :  { %448 = vrot.lane.b32.xlu1 %v1015_v37, %s874_s11  ;;  %792 = vmatprep.subr.mxu0 %v868_v3 }
 0x350   :  { %793 = vmatpush3.msra.mxu0 %v700_v43 }
 0x351   :  { %794 = vmatprep.subr.mxu0 %v868_v3 }
 0x352   :  { %795 = vmatpush3.msra.mxu0 %v699_v45 }
 0x353   :  { %796 = vmatprep.subr.mxu0 %v868_v3 }
 0x354   :  { %797 = vmatpush3.msra.mxu0 %v698_v47 }
 0x355   :  { %798 = vmatprep.subr.mxu0 %v868_v3 }
 0x356   :  { %799 = vmatpush3.msra.mxu0 %v697_v49 }
 0x357   :  { %800 = vmatprep.subr.mxu0 %v868_v3 }
 0x358   :  { %801 = vmatpush3.msra.mxu0 %v696_v51 }
 0x359   :  { %802 = vmatprep.subr.mxu0 %v868_v3 }
 0x35a   :  { %803 = vmatpush3.msra.mxu0 %v695_v53 }
 0x35b   :  { %804 = vmatprep.subr.mxu0 %v868_v3  ;;  %v457_v3 = vld [vmem:[%s1112_s5] sm:$0x3]  ;;  %s875_s5 = smov [#allocation2]  }
 0x35c   :  { %805 = vmatpush3.msra.mxu0 %v694_v55  ;;  %v461_v61 = vrot.slane %v457_v3, %v942_v9  ;;  %v467_v62 = vrot.slane %v457_v3, %v945_v11  ;;  %s673_s6 = sshll.u32 %s875_s5, 4  ;;  %s674_s6 = int_to_ptr.vmem [resolvable:$true] %s673_s6 }
 0x35d   :  { %s846_s23 = scalar_lea.vmem %s674_s6, 128  ;;  %p851_p1 = scmp.lt.s32.totalorder %s674_s6, %s674_s6 }
 0x35e   :  { %p847_p0 = scmp.ne.s32.totalorder %s674_s6, %s846_s23  ;;  %p852_p2 = scmp.lt.s32.totalorder %s846_s23, %s846_s23 }
 0x360   :  { %p853_p3 = por %p852_p2, %p851_p1 }
 0x362   :  { %p854_p4 = pnand %p853_p3, %p847_p0 }
 0x3bd   :  { %v443_v57 = vpop.permute.xlu1 %442  ;;  %v446_v58 = vpop.permute.xlu0 %445 }
 0x3be   :  { %v452_v59 = vsel %vm451_vm11, %v1015_v37, %v443_v57 }
 0x3bf   :  { %v454_v60 = vsel %vm453_vm12, %v452_v59, %v446_v58 }
 0x3c1   :  { %v449_v63 = vpop.permute.xlu1 %448 }
 0x3c2   :  { %v456_v0 = vsel %vm455_vm13, %v454_v60, %v449_v63 }
 0x3c3   :  { %v463_v1 = vmul.f32 2.0, %v456_v0  ;;  %v462_v2 = vsub.f32 %v456_v0, %v461_v61 }
 0x3c5   :  { %v468_v4 = vsub.f32 %v463_v1, %v467_v62 }
 0x3c7   :  { %v469_v6 = vmax.f32 %v462_v2, %v468_v4 }
 0x3c9   :  { %v470_v7 = vsub.f32 %v462_v2, %v469_v6  ;;  %v472_v8 = vsub.f32 %v468_v4, %v469_v6 }
 0x3cb   :  { %v471_v10 = vmul.f32 0.5, %v470_v7  ;;  %v473_v12 = vmul.f32 0.5, %v472_v8 }
 0x3cd   :  { %v474_v13 = vsub.f32 %v471_v10, %v473_v12 }
 0x3cf   :  { %v475_v14 = vand.u32 2147483647, %v474_v13 }
 0x3d1   :  { %v476_v15 = vmul.f32 %v475_v14, %v475_v14  ;;  %v481_v20 = vmul.f32 -0.5, %v475_v14  ;;  %vm480_vm0 = vcmp.le.f32.partialorder %v475_v14, 1.0 }
 0x3d3   :  { %v477_v16 = vsub.f32 2.0, %v476_v15 }
 0x3d5   :  { %v478_v17 = vmul.f32 0.25, %v477_v16 }
 0x3d7   :  { %v479_v18 = vmax.f32 %v478_v17, 0.0 }
 0x3d9   :  { %844 = vrsqrt.f32 %v479_v18  ;;  %vm484_vm14 = vcmp.eq.f32.partialorder %v479_v18, inf  ;;  %v487_v11 = vand.u32 2147483648, %v479_v18  ;;  %vm486_vm15 = vcmp.eq.f32.partialorder %v479_v18, 0.0 }
 0x3e6   :  { %v845_v9 = vpop.eup %844 }
 0x3e7   :  { %v483_v19 = vmul.f32 %v845_v9, %v479_v18 }
 0x3e9   :  { %v485_v21 = vsel %vm484_vm14, %v479_v18, %v483_v19 }
 0x3ea   :  { %v488_v22 = vsel %vm486_vm15, %v487_v11, %v485_v21 }
 0x3eb   :  { %v489_v23 = vsub.f32 %v481_v20, %v488_v22 }
 0x3ed   :  { %v490_v24 = vsel %vm480_vm0, %v489_v23, -1.0 }
 0x3ee   :  { %v491_v25 = vsub.f32 %v471_v10, %v490_v24  ;;  %v494_v26 = vsub.f32 %v473_v12, %v490_v24 }
 0x3f0   :  { %v492_v27 = vmax.f32 %v491_v25, 0.0  ;;  %v495_v28 = vmax.f32 %v494_v26, 0.0 }
 0x3f2   :  { %v493_v29 = vmul.f32 %v492_v27, %v492_v27  ;;  %v496_v30 = vmul.f32 %v495_v28, %v495_v28 }
 0x3f4   :  { %807 = vmatmul.mubr.msk.f32.vlgmr.msra.gmra.mxu0 %vm518_vm1, %v496_v30  ;;  %830 = vmatmul.mubr.msk.f32.vlgmr.msra.gmra.mxu1 %vm518_vm1, %v493_v29 }
 0x4b4   :  { %v588_v31 = vpop.f32.mrf.mxu0  ;;  %v661_v32 = vpop.f32.mrf.mxu1 }
 0x4b5   :  { %v662_v33 = vadd.f32 %v661_v32, %v588_v31 }
 0x4b6   :  { %v808_v34 = vpop.f32.mrf.mxu0  ;;  %v831_v35 = vpop.f32.mrf.mxu1 }
 0x4b7   :  { %666 = vst.msk [vmem:[#allocation2] sm:$0xff] %vm665_vm2, %v662_v33 }
 0x4b8   :  { %857 = shalt.err (!%p854_p4)
}
 0x4b9   :  { %676 = dma.vmem_to_hbm [thread:$0]  %s674_s6, 128, %s1114_s7, [#allocation3]  }
 0x4ba   :  { %866 = dma.done.wait [#allocation3], 128  }
 0x4bb   :  { %867 = vsyncadd [#allocation3], 4294967168 }
 0x4bc   :  { %680 = vsyncpa [#allocation3], 1 }

</bundles_post_ra>
